<compile_context>
chip_gen: v6e
topology: v6e:2x2x1
jax: 0.10.0
libtpu: 0.0.40
codegen_flags: <defaults>
</compile_context>

<pallas_src>
import functools

import jax
import jax.numpy as jnp
from jax.experimental import pallas as pl
from jax.experimental.pallas import tpu as pltpu


# ------------------------------ Pallas kernel -------------------------------

def _gconv_kernel(s_ref, x_ref, w_ref, b_ref, o_ref, *,
                  num_supports, max_diffusion_step):
    """Fused diffusion + projection for one batch element.

    s_ref: (P, N, N)  all diffusion supports (VMEM resident, shared over grid)
    x_ref: (1, N, C)  this batch element's [inputs, state] features
    w_ref: (M, C, D)  projection weight, one contiguous (C, D) tile per matrix
    b_ref: (1, D)     bias
    o_ref: (1, N, D)  per-batch output block
    """
    x0 = x_ref[0]                                            # (N, C)

    # m = 0 term; bias folded into the accumulator initialisation.
    acc = jnp.dot(x0, w_ref[0],
                  preferred_element_type=jnp.float32) + b_ref[...]

    m = 1
    if max_diffusion_step > 0:
        for p in range(num_supports):
            s = s_ref[p]                                     # (N, N)
            # NOTE: x0/x1 deliberately carry over from the previous support,
            # reproducing the original PyTorch implementation's quirk.
            x1 = jnp.dot(s, x0, preferred_element_type=jnp.float32)
            acc = acc + jnp.dot(x1, w_ref[m],
                                preferred_element_type=jnp.float32)
            m += 1
            for _ in range(2, max_diffusion_step + 1):
                x2 = 2.0 * jnp.dot(
                    s, x1, preferred_element_type=jnp.float32) - x0
                acc = acc + jnp.dot(x2, w_ref[m],
                                    preferred_element_type=jnp.float32)
                m += 1
                x1, x0 = x2, x1

    o_ref[0] = acc.astype(o_ref.dtype)


# ------------------------------ GCONV forward -------------------------------

@functools.partial(jax.jit, static_argnames=("num_nodes", "max_diffusion_step",
                                             "output_dim"))
def gconv_forward(inputs, state, supports, weight, biases, *,
                  num_nodes, max_diffusion_step, output_dim):
    batch_size = inputs.shape[0]
    inputs = inputs.reshape(batch_size, num_nodes, -1)
    state = state.reshape(batch_size, num_nodes, -1)
    x = jnp.concatenate([inputs, state], axis=2)             # (B, N, C)
    input_size = x.shape[2]

    num_supports = len(supports)
    num_matrices = num_supports * max_diffusion_step + 1

    s = jnp.stack(list(supports), axis=0).astype(jnp.float32)   # (P, N, N)
    # Original weight row index is c * num_matrices + m; re-order once to
    # (M, C, D) so the kernel slices a contiguous (C, D) tile per matrix m.
    w_r = jnp.transpose(
        weight.reshape(input_size, num_matrices, output_dim), (1, 0, 2))
    b2 = biases.reshape(1, output_dim)

    kernel = functools.partial(_gconv_kernel,
                               num_supports=num_supports,
                               max_diffusion_step=max_diffusion_step)

    out = pl.pallas_call(
        kernel,
        out_shape=jax.ShapeDtypeStruct(
            (batch_size, num_nodes, output_dim), jnp.float32),
        grid=(batch_size,),
        in_specs=[
            # Constant block indices -> fetched once, reused across the grid.
            pl.BlockSpec((num_supports, num_nodes, num_nodes),
                         lambda b: (0, 0, 0)),
            pl.BlockSpec((1, num_nodes, input_size), lambda b: (b, 0, 0)),
            pl.BlockSpec((num_matrices, input_size, output_dim),
                         lambda b: (0, 0, 0)),
            pl.BlockSpec((1, output_dim), lambda b: (0, 0)),
        ],
        out_specs=pl.BlockSpec((1, num_nodes, output_dim),
                               lambda b: (b, 0, 0)),
        compiler_params=pltpu.CompilerParams(
            dimension_semantics=("parallel",),      # megacore / v7x dual-TC
            vmem_limit_bytes=32 * 1024 * 1024),     # deliberate VMEM budget
    )(s, x, w_r, b2)

    # Free (metadata-only) reshape to the module's (B, N*output_dim) layout.
    return out.reshape(batch_size, num_nodes * output_dim)


# ------------------------- pure-JAX reference check --------------------------

def gconv_reference(inputs, state, supports, weight, biases, *,
                    num_nodes, max_diffusion_step, output_dim):
    """Direct transcription of the PyTorch module (including the x0 carry)."""
    batch_size = inputs.shape[0]
    inputs = inputs.reshape(batch_size, num_nodes, -1)
    state = state.reshape(batch_size, num_nodes, -1)
    x = jnp.concatenate([inputs, state], axis=2)
    input_size = x.shape[2]
    x0 = jnp.transpose(x, (1, 2, 0)).reshape(num_nodes, input_size * batch_size)
    xs = [x0]
    if max_diffusion_step > 0:
        for support in supports:
            x1 = support @ x0
            xs.append(x1)
            for _ in range(2, max_diffusion_step + 1):
                x2 = 2.0 * (support @ x1) - x0
                xs.append(x2)
                x1, x0 = x2, x1
    num_matrices = len(xs)
    x = jnp.stack(xs, 0).reshape(num_matrices, num_nodes, input_size, batch_size)
    x = jnp.transpose(x, (3, 1, 2, 0)).reshape(
        batch_size * num_nodes, input_size * num_matrices)
    x = x @ weight + biases
    return x.reshape(batch_size, num_nodes * output_dim)


# ------------------------------------ main -----------------------------------

if __name__ == "__main__":
    # Small deterministic configuration.
    num_nodes = 16
    max_diffusion_step = 2
    num_supports = 2
    input_dim = 4
    hid_dim = 8
    output_dim = 8
    batch_size = 2
    bias_start = 0.0

    input_size = input_dim + hid_dim
    num_matrices = num_supports * max_diffusion_step + 1

    key = jax.random.PRNGKey(0)
    k_in, k_st, k_adj1, k_adj2, k_w = jax.random.split(key, 5)

    inputs = jax.random.normal(k_in, (batch_size, num_nodes * input_dim),
                               dtype=jnp.float32)
    state = jax.random.normal(k_st, (batch_size, num_nodes * hid_dim),
                              dtype=jnp.float32)

    # Deterministic "supports": row-normalized random-walk matrices
    # (the module treats them as dense diffusion matrices).
    def random_walk(k):
        a = jax.random.uniform(k, (num_nodes, num_nodes), dtype=jnp.float32)
        return a / jnp.sum(a, axis=1, keepdims=True)

    supports = [random_walk(k_adj1), random_walk(k_adj2).T]

    # Xavier-normal weight init (gain=1), constant bias init.
    fan_in = input_size * num_matrices
    fan_out = output_dim
    std = (2.0 / (fan_in + fan_out)) ** 0.5
    weight = std * jax.random.normal(k_w, (fan_in, fan_out), dtype=jnp.float32)
    biases = jnp.full((output_dim,), bias_start, dtype=jnp.float32)

    out = gconv_forward(inputs, state, tuple(supports), weight, biases,
                        num_nodes=num_nodes,
                        max_diffusion_step=max_diffusion_step,
                        output_dim=output_dim)
    out = jax.block_until_ready(out)

    ref = gconv_reference(inputs, state, tuple(supports), weight, biases,
                          num_nodes=num_nodes,
                          max_diffusion_step=max_diffusion_step,
                          output_dim=output_dim)

    assert out.shape == (batch_size, num_nodes * output_dim)
    assert jnp.allclose(out, ref, atol=1e-4, rtol=1e-4)
    print("KERNEL_OK")
</pallas_src>

<mosaic_0001>
module attributes {stable_mosaic.version = 11 : i64} {
  func.func @_gconv_kernel(%arg0: i32, %arg1: memref<2x16x16xf32, #tpu.memory_space<vmem>>, %arg2: memref<1x16x12xf32, #tpu.memory_space<vmem>>, %arg3: memref<5x12x8xf32, #tpu.memory_space<vmem>>, %arg4: memref<1x8xf32, #tpu.memory_space<vmem>>, %arg5: memref<1x16x8xf32, #tpu.memory_space<vmem>>) attributes {dimension_semantics = [#tpu.dimension_semantics<parallel>], iteration_bounds = array<i64: 2>, scalar_prefetch = 0 : i64, scratch_operands = 0 : i64, tpu.core_type = #tpu.core_type<tc>, window_params = [{pipeline_mode = #tpu.pipeline_mode<synchronous>, transform_indices = @transform_0, window_bounds = array<i64: 2, 16, 16>}, {transform_indices = @transform_1, window_bounds = array<i64: 1, 16, 12>}, {pipeline_mode = #tpu.pipeline_mode<synchronous>, transform_indices = @transform_2, window_bounds = array<i64: 5, 12, 8>}, {pipeline_mode = #tpu.pipeline_mode<synchronous>, transform_indices = @transform_3, window_bounds = array<i64: 1, 8>}, {transform_indices = @transform_4, window_bounds = array<i64: 1, 16, 8>}]} {
    %c0 = arith.constant 0 : index
    %c0_0 = arith.constant 0 : index
    %c0_1 = arith.constant 0 : index
    %0 = vector.load %arg2[%c0, %c0_0, %c0_1] : memref<1x16x12xf32, #tpu.memory_space<vmem>>, vector<1x16x12xf32>
    %1 = vector.shape_cast %0 : vector<1x16x12xf32> to vector<16x12xf32>
    %c0_2 = arith.constant 0 : index
    %c0_3 = arith.constant 0 : index
    %c0_4 = arith.constant 0 : index
    %2 = vector.load %arg3[%c0_2, %c0_3, %c0_4] : memref<5x12x8xf32, #tpu.memory_space<vmem>>, vector<1x12x8xf32>
    %3 = vector.shape_cast %2 : vector<1x12x8xf32> to vector<12x8xf32>
    %cst = arith.constant dense<0.000000e+00> : vector<16x8xf32>
    %4 = tpu.matmul %1, %3, %cst {dimension_numbers = #tpu.dot_dimension_numbers<[1], [0], [0], [1], [0, 0, 1, 1], [], []>} : vector<16x12xf32>, vector<12x8xf32>, vector<16x8xf32> -> vector<16x8xf32>
    %c0_5 = arith.constant 0 : index
    %c0_6 = arith.constant 0 : index
    %5 = vector.load %arg4[%c0_5, %c0_6] : memref<1x8xf32, #tpu.memory_space<vmem>>, vector<1x8xf32>
    %6 = vector.broadcast %5 : vector<1x8xf32> to vector<16x8xf32>
    %7 = arith.addf %4, %6 : vector<16x8xf32>
    %c0_7 = arith.constant 0 : index
    %c0_8 = arith.constant 0 : index
    %c0_9 = arith.constant 0 : index
    %8 = vector.load %arg1[%c0_7, %c0_8, %c0_9] : memref<2x16x16xf32, #tpu.memory_space<vmem>>, vector<1x16x16xf32>
    %9 = vector.shape_cast %8 : vector<1x16x16xf32> to vector<16x16xf32>
    %cst_10 = arith.constant dense<0.000000e+00> : vector<16x12xf32>
    %10 = tpu.matmul %9, %1, %cst_10 {dimension_numbers = #tpu.dot_dimension_numbers<[1], [0], [0], [1], [0, 0, 1, 1], [], []>} : vector<16x16xf32>, vector<16x12xf32>, vector<16x12xf32> -> vector<16x12xf32>
    %c1 = arith.constant 1 : index
    %c0_11 = arith.constant 0 : index
    %c0_12 = arith.constant 0 : index
    %11 = vector.load %arg3[%c1, %c0_11, %c0_12] : memref<5x12x8xf32, #tpu.memory_space<vmem>>, vector<1x12x8xf32>
    %12 = vector.shape_cast %11 : vector<1x12x8xf32> to vector<12x8xf32>
    %cst_13 = arith.constant dense<0.000000e+00> : vector<16x8xf32>
    %13 = tpu.matmul %10, %12, %cst_13 {dimension_numbers = #tpu.dot_dimension_numbers<[1], [0], [0], [1], [0, 0, 1, 1], [], []>} : vector<16x12xf32>, vector<12x8xf32>, vector<16x8xf32> -> vector<16x8xf32>
    %14 = arith.addf %7, %13 : vector<16x8xf32>
    %cst_14 = arith.constant dense<0.000000e+00> : vector<16x12xf32>
    %15 = tpu.matmul %9, %10, %cst_14 {dimension_numbers = #tpu.dot_dimension_numbers<[1], [0], [0], [1], [0, 0, 1, 1], [], []>} : vector<16x16xf32>, vector<16x12xf32>, vector<16x12xf32> -> vector<16x12xf32>
    %cst_15 = arith.constant 2.000000e+00 : f32
    %16 = vector.broadcast %cst_15 : f32 to vector<16x12xf32>
    %17 = arith.mulf %16, %15 : vector<16x12xf32>
    %18 = arith.subf %17, %1 : vector<16x12xf32>
    %c2 = arith.constant 2 : index
    %c0_16 = arith.constant 0 : index
    %c0_17 = arith.constant 0 : index
    %19 = vector.load %arg3[%c2, %c0_16, %c0_17] : memref<5x12x8xf32, #tpu.memory_space<vmem>>, vector<1x12x8xf32>
    %20 = vector.shape_cast %19 : vector<1x12x8xf32> to vector<12x8xf32>
    %cst_18 = arith.constant dense<0.000000e+00> : vector<16x8xf32>
    %21 = tpu.matmul %18, %20, %cst_18 {dimension_numbers = #tpu.dot_dimension_numbers<[1], [0], [0], [1], [0, 0, 1, 1], [], []>} : vector<16x12xf32>, vector<12x8xf32>, vector<16x8xf32> -> vector<16x8xf32>
    %22 = arith.addf %14, %21 : vector<16x8xf32>
    %c1_19 = arith.constant 1 : index
    %c0_20 = arith.constant 0 : index
    %c0_21 = arith.constant 0 : index
    %23 = vector.load %arg1[%c1_19, %c0_20, %c0_21] : memref<2x16x16xf32, #tpu.memory_space<vmem>>, vector<1x16x16xf32>
    %24 = vector.shape_cast %23 : vector<1x16x16xf32> to vector<16x16xf32>
    %cst_22 = arith.constant dense<0.000000e+00> : vector<16x12xf32>
    %25 = tpu.matmul %24, %10, %cst_22 {dimension_numbers = #tpu.dot_dimension_numbers<[1], [0], [0], [1], [0, 0, 1, 1], [], []>} : vector<16x16xf32>, vector<16x12xf32>, vector<16x12xf32> -> vector<16x12xf32>
    %c3 = arith.constant 3 : index
    %c0_23 = arith.constant 0 : index
    %c0_24 = arith.constant 0 : index
    %26 = vector.load %arg3[%c3, %c0_23, %c0_24] : memref<5x12x8xf32, #tpu.memory_space<vmem>>, vector<1x12x8xf32>
    %27 = vector.shape_cast %26 : vector<1x12x8xf32> to vector<12x8xf32>
    %cst_25 = arith.constant dense<0.000000e+00> : vector<16x8xf32>
    %28 = tpu.matmul %25, %27, %cst_25 {dimension_numbers = #tpu.dot_dimension_numbers<[1], [0], [0], [1], [0, 0, 1, 1], [], []>} : vector<16x12xf32>, vector<12x8xf32>, vector<16x8xf32> -> vector<16x8xf32>
    %29 = arith.addf %22, %28 : vector<16x8xf32>
    %cst_26 = arith.constant dense<0.000000e+00> : vector<16x12xf32>
    %30 = tpu.matmul %24, %25, %cst_26 {dimension_numbers = #tpu.dot_dimension_numbers<[1], [0], [0], [1], [0, 0, 1, 1], [], []>} : vector<16x16xf32>, vector<16x12xf32>, vector<16x12xf32> -> vector<16x12xf32>
    %cst_27 = arith.constant 2.000000e+00 : f32
    %31 = vector.broadcast %cst_27 : f32 to vector<16x12xf32>
    %32 = arith.mulf %31, %30 : vector<16x12xf32>
    %33 = arith.subf %32, %10 : vector<16x12xf32>
    %c4 = arith.constant 4 : index
    %c0_28 = arith.constant 0 : index
    %c0_29 = arith.constant 0 : index
    %34 = vector.load %arg3[%c4, %c0_28, %c0_29] : memref<5x12x8xf32, #tpu.memory_space<vmem>>, vector<1x12x8xf32>
    %35 = vector.shape_cast %34 : vector<1x12x8xf32> to vector<12x8xf32>
    %cst_30 = arith.constant dense<0.000000e+00> : vector<16x8xf32>
    %36 = tpu.matmul %33, %35, %cst_30 {dimension_numbers = #tpu.dot_dimension_numbers<[1], [0], [0], [1], [0, 0, 1, 1], [], []>} : vector<16x12xf32>, vector<12x8xf32>, vector<16x8xf32> -> vector<16x8xf32>
    %37 = arith.addf %29, %36 : vector<16x8xf32>
    %c0_31 = arith.constant 0 : index
    %c0_32 = arith.constant 0 : index
    %c0_33 = arith.constant 0 : index
    %38 = vector.load %arg5[%c0_31, %c0_32, %c0_33] : memref<1x16x8xf32, #tpu.memory_space<vmem>>, vector<1x16x8xf32>
    %39 = vector.shape_cast %38 : vector<1x16x8xf32> to vector<16x8xf32>
    %40 = vector.shape_cast %37 : vector<16x8xf32> to vector<1x16x8xf32>
    tpu.vector_store %arg5[%c0_31, %c0_32, %c0_33], %40 {strides = array<i32>} : memref<1x16x8xf32, #tpu.memory_space<vmem>>, vector<1x16x8xf32>,
    return
  }
  func.func @transform_0(%arg0: i32) -> (i32, i32, i32) {
    %c0_i32 = arith.constant 0 : i32
    %c0_i32_0 = arith.constant 0 : i32
    %c0_i32_1 = arith.constant 0 : i32
    %c0_i32_2 = arith.constant 0 : i32
    return %c0_i32, %c0_i32_0, %c0_i32_1 : i32, i32, i32
  }
  func.func @transform_1(%arg0: i32) -> (i32, i32, i32) {
    %c0_i32 = arith.constant 0 : i32
    %c0_i32_0 = arith.constant 0 : i32
    %c0_i32_1 = arith.constant 0 : i32
    return %arg0, %c0_i32, %c0_i32_0 : i32, i32, i32
  }
  func.func @transform_2(%arg0: i32) -> (i32, i32, i32) {
    %c0_i32 = arith.constant 0 : i32
    %c0_i32_0 = arith.constant 0 : i32
    %c0_i32_1 = arith.constant 0 : i32
    %c0_i32_2 = arith.constant 0 : i32
    return %c0_i32, %c0_i32_0, %c0_i32_1 : i32, i32, i32
  }
  func.func @transform_3(%arg0: i32) -> (i32, i32) {
    %c0_i32 = arith.constant 0 : i32
    %c0_i32_0 = arith.constant 0 : i32
    %c0_i32_1 = arith.constant 0 : i32
    return %c0_i32, %c0_i32_0 : i32, i32
  }
  func.func @transform_4(%arg0: i32) -> (i32, i32, i32) {
    %c0_i32 = arith.constant 0 : i32
    %c0_i32_0 = arith.constant 0 : i32
    %c0_i32_1 = arith.constant 0 : i32
    return %arg0, %c0_i32, %c0_i32_0 : i32, i32, i32
  }
}

</mosaic_0001>

<bundles_post_ra>
// kernel: gconv_forward.1
= control target key start
LH: loop header
LB: loop body
LE: loop exit
PB: predicated region body
PF: predicated region fallthrough
CT: control target
= control target key end

     0   :  { %s1222_s15 = smov 0   ;;  %s1319_s0 = inlined_call_operand.vmem [shape: f32[2,16,16], index: 0, kind: input, shape index: {}]   ;;  %s1320_s1 = inlined_call_operand.vmem [shape: f32[2,16,12], index: 1, kind: input, shape index: {}]   ;;  %s1321_s2 = inlined_call_operand.vmem [shape: f32[5,12,8], index: 2, kind: input, shape index: {}]   ;;  %s1322_s3 = inlined_call_operand.vmem [shape: f32[1,8], index: 3, kind: input, shape index: {}]   ;;  %s1323_s4 = inlined_call_operand.vmem [shape: f32[2,16,8], index: 4, kind: output, shape index: {}]  }
   0x1 LB: > { %s1035_s16 = sadd.s32 4294967295, %s1195_s15   ;;  %p1039_p0 = scmp.ge.s32.totalorder %s1195_s15, 1  ;;  %s1195_s15 = sphi %s1222_s15, %s14_s15  }
   0x2   : > { %p162_p1 = scmp.lt.s32.totalorder %s1195_s15, 3 }
   0x4   : > { %p163_p2 = pnand %p1039_p0, %p162_p1 }
   0x5   : > { %p188_p3 = scmp.lt.s32.totalorder (!%p163_p2), %s1035_s16, 1 }
   0x6   : > { %166 = sbr.rel (%p163_p2) target bundleno = 816 (0x330), region = 36 }
   0xb   : > { %v295_v0 = vld [vmem:[%s1319_s0] sm:$0xff]  ;;  %vm297_vm0 = vcmask 130048   ;;  %v201_v1 = vld [vmem:[%s1321_s2 + $0x8] sm:$0xf]  ;;  %vm216_vm1 = vcmask 1043456   ;;  %s1325_s16 = smov (!%p188_p3, %s1035_s16), 1 }
   0xc   : > { %1129 = vmatprep.mubr.msk.f32.mxu1 %vm297_vm0, %v295_v0  ;;  %v200_v2 = vld [vmem:[%s1321_s2] sm:$0xff]  ;;  %1118 = vmatprep.subr.msk.mxu0 %vm216_vm1, %v201_v1  ;;  %s1080_s23 = sshll.u32 %s1325_s16, 4  ;;  %vm209_vm2 = vcmask 97280   ;;  %v296_v5 = vld [vmem:[%s1319_s0 + $0x8] sm:$0xff]  ;;  %v1051_v6 = vld [vmem:[%s1321_s2 + $0x18] sm:$0xf] }
   0xd   : > { %1119 = vmatpush3.msk.msra.mxu0 %vm216_vm1, %v201_v1  ;;  %s192_s26 = scalar_lea.vmem %s1320_s1, %s1080_s23  ;;  %v1050_v7 = vld [vmem:[%s1321_s2 + $0x10] sm:$0xff]  ;;  %v1063_v11 = vld [vmem:[%s1319_s0 + $0x18] sm:$0xff]  ;;  %v1058_v12 = vld [vmem:[%s1321_s2 + $0x28] sm:$0xf]  ;;  %s197_s30 = scalar_lea.vmem %s1323_s4, %s1080_s23  ;;  %vm977_vm3 = vcmask 64512  }
   0xe   : > { %1120 = vmatprep.subr.mxu0 %v200_v2  ;;  %v199_v3 = vld [vmem:[%s192_s26 + $0x8] sm:$0xff]  ;;  %v198_v4 = vld [vmem:[%s192_s26] sm:$0xff]  ;;  %v1062_v10 = vld [vmem:[%s1319_s0 + $0x10] sm:$0xff] }
   0xf   : > { %1121 = vmatpush3.msra.mxu0 %v200_v2  ;;  %1125 = vmatprep.subr.mxu1 %v199_v3  ;;  %v1057_v13 = vld [vmem:[%s1321_s2 + $0x20] sm:$0xff]  ;;  %v1067_v14 = vld [vmem:[%s1321_s2 + $0x38] sm:$0xf]  ;;  %v1066_v23 = vld [vmem:[%s1321_s2 + $0x30] sm:$0xff] }
  0x10   : > { %1122 = vmatprep.mubr.msk.f32.mxu0 %vm209_vm2, %v198_v4  ;;  %1126 = vmatpush3.msra.mxu1 %v199_v3  ;;  %v1074_v24 = vld [vmem:[%s1321_s2 + $0x48] sm:$0xf]  ;;  %v1073_v25 = vld [vmem:[%s1321_s2 + $0x40] sm:$0xff] }
  0x11   : > { %1123 = vmatmul.mubr.msk.f32.vlgmr.msra.gmra.mxu0 %vm209_vm2, %v199_v3  ;;  %1127 = vmatprep.subr.mxu1 %v198_v4  ;;  %v1044_v37 = vld [vmem:[%s1322_s3] ss:$0 sm:$0xff] }
  0x12   : > { %1128 = vmatpush3.msra.mxu1 %v198_v4  ;;  %1132 = vmatprep.subr.msk.mxu0 %vm216_vm1, %v1051_v6 }
  0x13   : > { %1130 = vmatmul.mubr.msk.f32.vlgmr.msra.gmra.mxu1 %vm297_vm0, %v296_v5  ;;  %1133 = vmatpush3.msk.msra.mxu0 %vm216_vm1, %v1051_v6 }
  0x14   : > { %1143 = vmatprep.mubr.msk.f32.mxu1 %vm297_vm0, %v295_v0  ;;  %1134 = vmatprep.subr.mxu0 %v1050_v7 }
  0x15   : > { %1135 = vmatpush3.msra.mxu0 %v1050_v7 }
  0x16   : > { %1146 = vmatprep.subr.msk.mxu0 %vm216_vm1, %v1058_v12 }
  0xd1   : > { %v1124_v32 = vpop.f32.mrf.mxu0 }
  0xd2   : > { %v292_v39 = vadd.f32 %v1124_v32, %v1044_v37 }
  0xd3   : > { %v1131_v8 = vpop.f32.mrf.mxu1  ;;  %v286_v33 = vpop.f32.mrf.mxu0 }
  0xd4   : > { %1139 = vmatprep.subr.mxu1 %v1131_v8  ;;  %v287_v40 = vadd.f32 %v1044_v37, %v286_v33 }
  0xd5   : > { %v370_v9 = vpop.f32.mrf.mxu1  ;;  %1140 = vmatpush3.msra.mxu1 %v1131_v8 }
  0xd6   : > { %1136 = vmatprep.mubr.msk.f32.mxu0 %vm209_vm2, %v370_v9  ;;  %1141 = vmatprep.subr.mxu1 %v370_v9 }
  0xd7   : > { %1137 = vmatmul.mubr.msk.f32.vlgmr.msra.gmra.mxu0 %vm209_vm2, %v1131_v8  ;;  %1142 = vmatpush3.msra.mxu1 %v370_v9 }
  0xd8   : > { %1144 = vmatmul.mubr.msk.f32.vlgmr.msra.gmra.mxu1 %vm297_vm0, %v296_v5  ;;  %1153 = vmatprep.subr.mxu1 %v1131_v8 }
  0xd9   : > { %1154 = vmatpush3.msra.mxu1 %v1131_v8  ;;  %1157 = vmatprep.mubr.msk.f32.mxu1 %vm297_vm0, %v1062_v10 }
  0xda   : > { %1155 = vmatprep.subr.mxu1 %v370_v9  ;;  %1147 = vmatpush3.msk.msra.mxu0 %vm216_vm1, %v1058_v12 }
  0xdb   : > { %1156 = vmatpush3.msra.mxu1 %v370_v9  ;;  %1148 = vmatprep.subr.mxu0 %v1057_v13 }
  0xdc   : > { %1158 = vmatmul.mubr.msk.f32.vlgmr.msra.gmra.mxu1 %vm297_vm0, %v1063_v11  ;;  %1149 = vmatpush3.msra.mxu0 %v1057_v13 }
  0xdd   : > { %1171 = vmatprep.mubr.msk.f32.mxu1 %vm297_vm0, %v1062_v10  ;;  %1160 = vmatprep.subr.msk.mxu0 %vm216_vm1, %v1067_v14 }
 0x197   : > { %v1138_v34 = vpop.f32.mrf.mxu0 }
 0x198   : > { %v1145_v15 = vpop.f32.mrf.mxu1  ;;  %v467_v42 = vadd.f32 %v1138_v34, %v292_v39 }
 0x199   : > { %v544_v16 = vmul.f32 2.0, %v1145_v15  ;;  %v457_v35 = vpop.f32.mrf.mxu0 }
 0x19a   : > { %v534_v17 = vpop.f32.mrf.mxu1  ;;  %v466_v43 = vadd.f32 %v457_v35, %v287_v40 }
 0x19b   : > { %v543_v18 = vmul.f32 2.0, %v534_v17  ;;  %v546_v21 = vsub.f32 %v544_v16, %v199_v3 }
 0x19c   : > { %v1159_v19 = vpop.f32.mrf.mxu1 }
 0x19d   : > { %v545_v20 = vsub.f32 %v543_v18, %v198_v4  ;;  %1167 = vmatprep.subr.mxu1 %v1159_v19 }
 0x19e   : > { %v711_v22 = vpop.f32.mrf.mxu1  ;;  %1168 = vmatpush3.msra.mxu1 %v1159_v19 }
 0x19f   : > { %1150 = vmatprep.mubr.msk.f32.mxu0 %vm209_vm2, %v545_v20  ;;  %1169 = vmatprep.subr.mxu1 %v711_v22 }
 0x1a0   : > { %1151 = vmatmul.mubr.msk.f32.vlgmr.msra.gmra.mxu0 %vm209_vm2, %v546_v21  ;;  %1170 = vmatpush3.msra.mxu1 %v711_v22 }
 0x1a1   : > { %1161 = vmatpush3.msk.msra.mxu0 %vm216_vm1, %v1067_v14  ;;  %1164 = vmatprep.mubr.msk.f32.mxu0 %vm209_vm2, %v711_v22 }
 0x1a2   : > { %1172 = vmatmul.mubr.msk.f32.vlgmr.msra.gmra.mxu1 %vm297_vm0, %v1063_v11  ;;  %1162 = vmatprep.subr.mxu0 %v1066_v23 }
 0x1a3   : > { %1163 = vmatpush3.msra.mxu0 %v1066_v23 }
 0x1a4   : > { %1165 = vmatmul.mubr.msk.f32.vlgmr.msra.gmra.mxu0 %vm209_vm2, %v1159_v19  ;;  %1174 = vmatprep.subr.msk.mxu0 %vm216_vm1, %v1074_v24 }
 0x1a5   : > { %1175 = vmatpush3.msk.msra.mxu0 %vm216_vm1, %v1074_v24 }
 0x1a6   : > { %1176 = vmatprep.subr.mxu0 %v1073_v25 }
 0x1a7   : > { %1177 = vmatpush3.msra.mxu0 %v1073_v25 }
 0x260   : > { %v1152_v36 = vpop.f32.mrf.mxu0 }
 0x261   : > { %v635_v44 = vadd.f32 %v1152_v36, %v467_v42 }
 0x262   : > { %v1173_v26 = vpop.f32.mrf.mxu1  ;;  %v625_v38 = vpop.f32.mrf.mxu0 }
 0x263   : > { %v885_v27 = vmul.f32 2.0, %v1173_v26  ;;  %v634_v46 = vadd.f32 %v625_v38, %v466_v43 }
 0x264   : > { %v875_v28 = vpop.f32.mrf.mxu1  ;;  %v1166_v41 = vpop.f32.mrf.mxu0 }
 0x265   : > { %v884_v29 = vmul.f32 2.0, %v875_v28  ;;  %v887_v31 = vsub.f32 %v885_v27, %v1131_v8  ;;  %v808_v47 = vadd.f32 %v1166_v41, %v635_v44 }
 0x266   : > { %v798_v45 = vpop.f32.mrf.mxu0 }
 0x267   : > { %v886_v30 = vsub.f32 %v884_v29, %v370_v9  ;;  %v807_v49 = vadd.f32 %v798_v45, %v634_v46 }
 0x269   : > { %1178 = vmatprep.mubr.msk.f32.mxu0 %vm209_vm2, %v886_v30 }
 0x26a   : > { %1179 = vmatmul.mubr.msk.f32.vlgmr.msra.gmra.mxu0 %vm209_vm2, %v887_v31 }
 0x32a   : > { %v1180_v48 = vpop.f32.mrf.mxu0 }
 0x32b   : > { %v976_v50 = vadd.f32 %v1180_v48, %v808_v47 }
 0x32c   : > { %v966_v51 = vpop.f32.mrf.mxu0 }
 0x32d   : > { %979 = vst.msk [vmem:[%s197_s30 + $0x8] sm:$0xff] %vm977_vm3, %v976_v50  ;;  %v975_v52 = vadd.f32 %v966_v51, %v807_v49 }
 0x32f   : > { %978 = vst.msk [vmem:[%s197_s30] sm:$0xff] %vm977_vm3, %v975_v52 }
 0x330 PF: > { %s14_s15 = sadd.s32 1, %s1195_s15  }
 0x331   : > { %p11_p4 = scmp.ge.s32.totalorder %s14_s15, 4  }
 0x333   :  { %13 = sbr.rel (!%p11_p4) target bundleno = 1 (0x1), region = 71 }

</bundles_post_ra>
